<compile_context>
chip_gen: v7x
topology: tpu7x:2x2x1
jax: 0.10.0
libtpu: 0.0.40
codegen_flags: <defaults>
</compile_context>

<pallas_src>
import functools

import jax
import jax.numpy as jnp
from jax.experimental import pallas as pl


def _round_up(x, m):
    return ((x + m - 1) // m) * m


# ----------------------------------------------------------------------------
# Pallas kernels. x is channel-major and lane-packed: shape (8, sum(widths)),
# level l occupies lanes [offsets[l], offsets[l] + widths[l]); row 3 of x is a
# constant-one row over valid columns (carries the biases), rows 4..7 are 0.
# Grid-less call: every ref is a whole-array VMEM block (working set < 0.5 MiB).
# ----------------------------------------------------------------------------
def _feat_kernel(x_ref, w0_ref, w1_ref, w2_ref, w3_ref,
                 o0_ref, o1_ref, o2_ref, o3_ref, *, offsets, widths):
    # proj_type == 0: feats only.  W_l is (c1_l, 8) with column 3 = b1_l.
    w_refs = (w0_ref, w1_ref, w2_ref, w3_ref)
    o_refs = (o0_ref, o1_ref, o2_ref, o3_ref)
    for l in range(4):                                  # static unroll
        off, wd = offsets[l], widths[l]                 # 128-aligned statics
        xl = x_ref[:, off:off + wd]
        h = jnp.dot(w_refs[l][...], xl, preferred_element_type=jnp.float32)
        o_refs[l][...] = jnp.maximum(h, 0.0).astype(o_refs[l].dtype)


def _mix_kernel(x_ref, w1_0_ref, w1_1_ref, w1_2_ref, w1_3_ref,
                w2_0_ref, w2_1_ref, w2_2_ref, w2_3_ref,
                o0_ref, o1_ref, o2_ref, o3_ref, *, offsets, widths):
    # proj_type == 1: channel-mixed outputs only.
    # W1_l is (c1_l + 8, 8): rows [:c1] = backbone 1x1 with col 3 = b1,
    #   row c1 = e_3 so h row c1 == 1 on valid columns (homogeneous row).
    # W2_l is (c2_l, c1_l + 8): cols [:c1] = CCM 1x1, col c1 = b2.
    w1_refs = (w1_0_ref, w1_1_ref, w1_2_ref, w1_3_ref)
    w2_refs = (w2_0_ref, w2_1_ref, w2_2_ref, w2_3_ref)
    o_refs = (o0_ref, o1_ref, o2_ref, o3_ref)
    for l in range(4):                                  # static unroll
        off, wd = offsets[l], widths[l]
        xl = x_ref[:, off:off + wd]
        h = jnp.maximum(
            jnp.dot(w1_refs[l][...], xl, preferred_element_type=jnp.float32),
            0.0)                                        # feat + ReLU (f32 epilogue)
        y = jnp.dot(w2_refs[l][...], h, preferred_element_type=jnp.float32)
        o_refs[l][...] = y.astype(o_refs[l].dtype)


# ----------------------------------------------------------------------------
# Deterministic parameter init (PyTorch-conv-like uniform fan-in scaling)
# weight layout is (Cout, Cin), matching nn.Conv2d(k=1) weight[:, :, 0, 0].
# ----------------------------------------------------------------------------
def _init_conv1x1(key, cin, cout, dtype=jnp.float32):
    kw, kb = jax.random.split(key)
    bound = 1.0 / float(cin) ** 0.5
    w = jax.random.uniform(kw, (cout, cin), dtype, -bound, bound)
    b = jax.random.uniform(kb, (cout,), dtype, -bound, bound)
    return w, b


# ----------------------------------------------------------------------------
# Proj: synthetic backbone feats -> CCM (1x1 convs, expand=True), fused kernel
# ----------------------------------------------------------------------------
class Proj:
    CIN_PAD = 8          # 3 image channels + 1 ones (bias) row + 4 zero rows

    def __init__(self, *, cout=16, expand=True, proj_type=1, img_size=64,
                 backbone_channels=(8, 16, 32, 48), seed=0):
        assert proj_type in (0, 1, 2), 'Invalid projection type'
        if proj_type == 2:
            # TODO(synk): proj_type=2 (CSM) fusion blocks not defined in source.
            raise NotImplementedError("proj_type=2 (CSM) is not implemented")
        self.proj_type = proj_type
        self.cout = cout
        self.expand = expand
        self.backbone_channels = list(backbone_channels)
        self.strides = [4, 8, 16, 32]                 # efficientnet-like pyramid
        self.RESOLUTIONS = [img_size // s for s in self.strides]
        self.ccm_channels = ([cout, cout * 2, cout * 4, cout * 8]
                             if expand else [cout] * 4)
        self.CHANNELS = (self.backbone_channels if proj_type == 0
                         else self.ccm_channels)

        keys = jax.random.split(jax.random.PRNGKey(seed), 8)
        # synthetic-backbone per-level 1x1 projections (3 -> backbone_channels[l])
        self.backbone_params = [
            _init_conv1x1(keys[l], 3, self.backbone_channels[l]) for l in range(4)
        ]
        # CCM: layer{l}_ccm = conv(in_channels[l], out_channels[l], k=1, bias=True)
        self.ccm_params = None
        if proj_type >= 1:
            self.ccm_params = [
                _init_conv1x1(keys[4 + l], self.backbone_channels[l],
                              self.ccm_channels[l]) for l in range(4)
            ]

        # Bias-folded, zero-padded kernel weights (built once at init).
        if proj_type == 0:
            ws = []
            for l in range(4):
                c1 = self.backbone_channels[l]
                w1, b1 = self.backbone_params[l]
                wf = jnp.zeros((c1, self.CIN_PAD), jnp.float32)
                wf = wf.at[:, :3].set(w1).at[:, 3].set(b1)
                ws.append(wf)
            self.kernel_weights = ws
        else:
            w1s, w2s = [], []
            for l in range(4):
                c1 = self.backbone_channels[l]
                c2 = self.ccm_channels[l]
                c1a = c1 + 8          # extra rows: row c1 regenerates the ones row
                w1, b1 = self.backbone_params[l]
                w2, b2 = self.ccm_params[l]
                w1a = jnp.zeros((c1a, self.CIN_PAD), jnp.float32)
                w1a = w1a.at[:c1, :3].set(w1).at[:c1, 3].set(b1).at[c1, 3].set(1.0)
                w2a = jnp.zeros((c2, c1a), jnp.float32)
                w2a = w2a.at[:, :c1].set(w2).at[:, c1].set(b2)
                w1s.append(w1a)
                w2s.append(w2a)
            self.kernel_weights = w1s + w2s

    # --- forward (mirrors Proj.forward for proj_type in {0, 1}) --------------
    def __call__(self, x):
        B, C, H, W = x.shape
        # lane-packed channel-major layout: level l occupies lanes
        # [off_l, off_l + B*P_l), rounded up to a 128 multiple; batch is folded
        # into the lane axis so the kernel does ONE matmul (chain) per level.
        P = [(H // s) * (W // s) for s in self.strides]
        widths = [max(128, _round_up(B * p, 128)) for p in P]
        offsets = [0]
        for wdt in widths[:-1]:
            offsets.append(offsets[-1] + wdt)

        blocks = []
        for l, s in enumerate(self.strides):
            pooled = x.reshape(B, C, H // s, s, W // s, s).mean(axis=(3, 5))
            p = pooled.reshape(B, C, -1).transpose(1, 0, 2).reshape(C, -1)  # (3, B*P_l)
            blk = jnp.concatenate([
                p,
                jnp.ones((1, p.shape[1]), x.dtype),          # homogeneous (bias) row
                jnp.zeros((self.CIN_PAD - C - 1, p.shape[1]), x.dtype),
            ], axis=0)
            blk = jnp.pad(blk, ((0, 0), (0, widths[l] - p.shape[1])))
            blocks.append(blk)
        x_packed = jnp.concatenate(blocks, axis=1)           # (8, sum(widths))
        # Padded lane columns are all-zero (incl. the ones row), so padded
        # output columns are exactly zero; the unpack below slices them away.

        out_channels = self.CHANNELS
        flops = 0
        for l in range(4):
            if self.proj_type == 0:
                flops += 2 * out_channels[l] * self.CIN_PAD * widths[l]
            else:
                c1a = self.backbone_channels[l] + 8
                flops += 2 * c1a * self.CIN_PAD * widths[l]
                flops += 2 * out_channels[l] * c1a * widths[l]
        bytes_accessed = 4 * (x_packed.size
                              + sum(int(w.size) for w in self.kernel_weights)
                              + sum(out_channels[l] * widths[l] for l in range(4)))

        kernel_fn = _feat_kernel if self.proj_type == 0 else _mix_kernel
        outs = pl.pallas_call(
            functools.partial(kernel_fn, offsets=tuple(offsets),
                              widths=tuple(widths)),
            out_shape=tuple(jax.ShapeDtypeStruct((out_channels[l], widths[l]),
                                                 x.dtype) for l in range(4)),
            cost_estimate=pl.CostEstimate(flops=flops, transcendentals=0,
                                          bytes_accessed=bytes_accessed),
        )(x_packed, *self.kernel_weights)

        result = {}
        for l, k in enumerate(['0', '1', '2', '3']):
            r = self.RESOLUTIONS[l]
            c = out_channels[l]
            y = outs[l][:, :B * P[l]].reshape(c, B, r, r).transpose(1, 0, 2, 3)
            result[k] = y
        return result


# ----------------------------------------------------------------------------
# main
# ----------------------------------------------------------------------------
if __name__ == "__main__":
    key = jax.random.PRNGKey(0)
    B, C, H, W = 2, 3, 64, 64
    x = jax.random.normal(key, (B, C, H, W), jnp.float32)    # NCHW, like PyTorch

    proj1 = Proj(cout=16, expand=True, proj_type=1, img_size=H)
    proj0 = Proj(cout=16, expand=True, proj_type=0, img_size=H)   # same seed

    out_mix = jax.tree_util.tree_map(jax.block_until_ready,
                                     jax.jit(proj1.__call__)(x))
    out_feat = jax.tree_util.tree_map(jax.block_until_ready,
                                      jax.jit(proj0.__call__)(x))

    # shape + numerical checks against a plain-JAX reference (all 4 levels)
    for l, k in enumerate(['0', '1', '2', '3']):
        r = proj1.RESOLUTIONS[l]
        assert out_mix[k].shape == (B, proj1.CHANNELS[l], r, r), out_mix[k].shape
        assert out_feat[k].shape == (B, proj0.CHANNELS[l], r, r), out_feat[k].shape

        s = proj1.strides[l]
        pooled = x.reshape(B, C, H // s, s, W // s, s).mean(axis=(3, 5))
        w1, b1 = proj1.backbone_params[l]
        w2, b2 = proj1.ccm_params[l]
        h_ref = jnp.einsum('oc,bchw->bohw', w1, pooled,
                           precision=jax.lax.Precision.HIGHEST)
        h_ref = jnp.maximum(h_ref + b1[None, :, None, None], 0.0)
        y_ref = jnp.einsum('oc,bchw->bohw', w2, h_ref,
                           precision=jax.lax.Precision.HIGHEST)
        y_ref = y_ref + b2[None, :, None, None]

        assert jnp.allclose(out_feat[k], h_ref, atol=1e-4, rtol=1e-4), k
        assert jnp.allclose(out_mix[k], y_ref, atol=1e-4, rtol=1e-4), k

    print("KERNEL_OK")
</pallas_src>

<mosaic_0001>
module attributes {stable_mosaic.version = 11 : i64} {
  func.func @_mix_kernel(%arg0: memref<8x896xf32, #tpu.memory_space<vmem>>, %arg1: memref<16x8xf32, #tpu.memory_space<vmem>>, %arg2: memref<24x8xf32, #tpu.memory_space<vmem>>, %arg3: memref<40x8xf32, #tpu.memory_space<vmem>>, %arg4: memref<56x8xf32, #tpu.memory_space<vmem>>, %arg5: memref<16x16xf32, #tpu.memory_space<vmem>>, %arg6: memref<32x24xf32, #tpu.memory_space<vmem>>, %arg7: memref<64x40xf32, #tpu.memory_space<vmem>>, %arg8: memref<128x56xf32, #tpu.memory_space<vmem>>, %arg9: memref<16x512xf32, #tpu.memory_space<vmem>>, %arg10: memref<32x128xf32, #tpu.memory_space<vmem>>, %arg11: memref<64x128xf32, #tpu.memory_space<vmem>>, %arg12: memref<128x128xf32, #tpu.memory_space<vmem>>) attributes {dimension_semantics = [], scalar_prefetch = 0 : i64, scratch_operands = 0 : i64, tpu.core_type = #tpu.core_type<tc>} {
    %c0 = arith.constant 0 : index
    %c0_0 = arith.constant 0 : index
    %0 = vector.load %arg0[%c0, %c0_0] : memref<8x896xf32, #tpu.memory_space<vmem>>, vector<8x512xf32>
    %c0_1 = arith.constant 0 : index
    %c0_2 = arith.constant 0 : index
    %1 = vector.load %arg1[%c0_1, %c0_2] : memref<16x8xf32, #tpu.memory_space<vmem>>, vector<16x8xf32>
    %cst = arith.constant dense<0.000000e+00> : vector<16x512xf32>
    %2 = tpu.matmul %1, %0, %cst {dimension_numbers = #tpu.dot_dimension_numbers<[1], [0], [0], [1], [0, 0, 1, 1], [], []>} : vector<16x8xf32>, vector<8x512xf32>, vector<16x512xf32> -> vector<16x512xf32>
    %cst_3 = arith.constant 0.000000e+00 : f32
    %3 = vector.broadcast %cst_3 : f32 to vector<16x512xf32>
    %4 = arith.maximumf %2, %3 : vector<16x512xf32>
    %c0_4 = arith.constant 0 : index
    %c0_5 = arith.constant 0 : index
    %5 = vector.load %arg5[%c0_4, %c0_5] : memref<16x16xf32, #tpu.memory_space<vmem>>, vector<16x16xf32>
    %cst_6 = arith.constant dense<0.000000e+00> : vector<16x512xf32>
    %6 = tpu.matmul %5, %4, %cst_6 {dimension_numbers = #tpu.dot_dimension_numbers<[1], [0], [0], [1], [0, 0, 1, 1], [], []>} : vector<16x16xf32>, vector<16x512xf32>, vector<16x512xf32> -> vector<16x512xf32>
    %c0_7 = arith.constant 0 : index
    %c0_8 = arith.constant 0 : index
    %7 = vector.load %arg9[%c0_7, %c0_8] : memref<16x512xf32, #tpu.memory_space<vmem>>, vector<16x512xf32>
    tpu.vector_store %arg9[%c0_7, %c0_8], %6 {strides = array<i32>} : memref<16x512xf32, #tpu.memory_space<vmem>>, vector<16x512xf32>,
    %c0_9 = arith.constant 0 : index
    %c512 = arith.constant 512 : index
    %8 = vector.load %arg0[%c0_9, %c512] : memref<8x896xf32, #tpu.memory_space<vmem>>, vector<8x128xf32>
    %c0_10 = arith.constant 0 : index
    %c0_11 = arith.constant 0 : index
    %9 = vector.load %arg2[%c0_10, %c0_11] : memref<24x8xf32, #tpu.memory_space<vmem>>, vector<24x8xf32>
    %cst_12 = arith.constant dense<0.000000e+00> : vector<24x128xf32>
    %10 = tpu.matmul %9, %8, %cst_12 {dimension_numbers = #tpu.dot_dimension_numbers<[1], [0], [0], [1], [0, 0, 1, 1], [], []>} : vector<24x8xf32>, vector<8x128xf32>, vector<24x128xf32> -> vector<24x128xf32>
    %cst_13 = arith.constant 0.000000e+00 : f32
    %11 = vector.broadcast %cst_13 : f32 to vector<24x128xf32>
    %12 = arith.maximumf %10, %11 : vector<24x128xf32>
    %c0_14 = arith.constant 0 : index
    %c0_15 = arith.constant 0 : index
    %13 = vector.load %arg6[%c0_14, %c0_15] : memref<32x24xf32, #tpu.memory_space<vmem>>, vector<32x24xf32>
    %cst_16 = arith.constant dense<0.000000e+00> : vector<32x128xf32>
    %14 = tpu.matmul %13, %12, %cst_16 {dimension_numbers = #tpu.dot_dimension_numbers<[1], [0], [0], [1], [0, 0, 1, 1], [], []>} : vector<32x24xf32>, vector<24x128xf32>, vector<32x128xf32> -> vector<32x128xf32>
    %c0_17 = arith.constant 0 : index
    %c0_18 = arith.constant 0 : index
    %15 = vector.load %arg10[%c0_17, %c0_18] : memref<32x128xf32, #tpu.memory_space<vmem>>, vector<32x128xf32>
    tpu.vector_store %arg10[%c0_17, %c0_18], %14 {strides = array<i32>} : memref<32x128xf32, #tpu.memory_space<vmem>>, vector<32x128xf32>,
    %c0_19 = arith.constant 0 : index
    %c640 = arith.constant 640 : index
    %16 = vector.load %arg0[%c0_19, %c640] : memref<8x896xf32, #tpu.memory_space<vmem>>, vector<8x128xf32>
    %c0_20 = arith.constant 0 : index
    %c0_21 = arith.constant 0 : index
    %17 = vector.load %arg3[%c0_20, %c0_21] : memref<40x8xf32, #tpu.memory_space<vmem>>, vector<40x8xf32>
    %cst_22 = arith.constant dense<0.000000e+00> : vector<40x128xf32>
    %18 = tpu.matmul %17, %16, %cst_22 {dimension_numbers = #tpu.dot_dimension_numbers<[1], [0], [0], [1], [0, 0, 1, 1], [], []>} : vector<40x8xf32>, vector<8x128xf32>, vector<40x128xf32> -> vector<40x128xf32>
    %cst_23 = arith.constant 0.000000e+00 : f32
    %19 = vector.broadcast %cst_23 : f32 to vector<40x128xf32>
    %20 = arith.maximumf %18, %19 : vector<40x128xf32>
    %c0_24 = arith.constant 0 : index
    %c0_25 = arith.constant 0 : index
    %21 = vector.load %arg7[%c0_24, %c0_25] : memref<64x40xf32, #tpu.memory_space<vmem>>, vector<64x40xf32>
    %cst_26 = arith.constant dense<0.000000e+00> : vector<64x128xf32>
    %22 = tpu.matmul %21, %20, %cst_26 {dimension_numbers = #tpu.dot_dimension_numbers<[1], [0], [0], [1], [0, 0, 1, 1], [], []>} : vector<64x40xf32>, vector<40x128xf32>, vector<64x128xf32> -> vector<64x128xf32>
    %c0_27 = arith.constant 0 : index
    %c0_28 = arith.constant 0 : index
    %23 = vector.load %arg11[%c0_27, %c0_28] : memref<64x128xf32, #tpu.memory_space<vmem>>, vector<64x128xf32>
    tpu.vector_store %arg11[%c0_27, %c0_28], %22 {strides = array<i32>} : memref<64x128xf32, #tpu.memory_space<vmem>>, vector<64x128xf32>,
    %c0_29 = arith.constant 0 : index
    %c768 = arith.constant 768 : index
    %24 = vector.load %arg0[%c0_29, %c768] : memref<8x896xf32, #tpu.memory_space<vmem>>, vector<8x128xf32>
    %c0_30 = arith.constant 0 : index
    %c0_31 = arith.constant 0 : index
    %25 = vector.load %arg4[%c0_30, %c0_31] : memref<56x8xf32, #tpu.memory_space<vmem>>, vector<56x8xf32>
    %cst_32 = arith.constant dense<0.000000e+00> : vector<56x128xf32>
    %26 = tpu.matmul %25, %24, %cst_32 {dimension_numbers = #tpu.dot_dimension_numbers<[1], [0], [0], [1], [0, 0, 1, 1], [], []>} : vector<56x8xf32>, vector<8x128xf32>, vector<56x128xf32> -> vector<56x128xf32>
    %cst_33 = arith.constant 0.000000e+00 : f32
    %27 = vector.broadcast %cst_33 : f32 to vector<56x128xf32>
    %28 = arith.maximumf %26, %27 : vector<56x128xf32>
    %c0_34 = arith.constant 0 : index
    %c0_35 = arith.constant 0 : index
    %29 = vector.load %arg8[%c0_34, %c0_35] : memref<128x56xf32, #tpu.memory_space<vmem>>, vector<128x56xf32>
    %cst_36 = arith.constant dense<0.000000e+00> : vector<128x128xf32>
    %30 = tpu.matmul %29, %28, %cst_36 {dimension_numbers = #tpu.dot_dimension_numbers<[1], [0], [0], [1], [0, 0, 1, 1], [], []>} : vector<128x56xf32>, vector<56x128xf32>, vector<128x128xf32> -> vector<128x128xf32>
    %c0_37 = arith.constant 0 : index
    %c0_38 = arith.constant 0 : index
    %31 = vector.load %arg12[%c0_37, %c0_38] : memref<128x128xf32, #tpu.memory_space<vmem>>, vector<128x128xf32>
    tpu.vector_store %arg12[%c0_37, %c0_38], %30 {strides = array<i32>} : memref<128x128xf32, #tpu.memory_space<vmem>>, vector<128x128xf32>,
    return
  }
}

</mosaic_0001>

<bundles_post_ra>
// kernel: a_call__.1
= control target key start
LH: loop header
LB: loop body
LE: loop exit
PB: predicated region body
PF: predicated region fallthrough
CT: control target
= control target key end

     0   :  { %v1493_v2 = vmov 0.0   ;;  %vm42_vm0 = vcmask 64512   ;;  %vm213_vm1 = vcmask 130048   ;;  %vm1494_vm2 = vmmov 0   ;;  %s1922_s0 = inlined_call_operand.vmem [shape: f32[8,896], index: 0, kind: input, shape index: {}]   ;;  %s1923_s1 = inlined_call_operand.vmem [shape: f32[16,8], index: 1, kind: input, shape index: {}]   ;;  %s1924_s5 = inlined_call_operand.vmem [shape: f32[16,16], index: 5, kind: input, shape index: {}]   ;;  %s1925_s2 = inlined_call_operand.vmem [shape: f32[24,8], index: 2, kind: input, shape index: {}]   ;;  %s1926_s6 = inlined_call_operand.vmem [shape: f32[32,24], index: 6, kind: input, shape index: {}]   ;;  %s1927_s9 = inlined_call_operand.vmem [shape: f32[16,512], index: 9, kind: output, shape index: {0}]   ;;  %s1928_s3 = inlined_call_operand.vmem [shape: f32[40,8], index: 3, kind: input, shape index: {}]   ;;  %s1929_s7 = inlined_call_operand.vmem [shape: f32[64,40], index: 7, kind: input, shape index: {}]   ;;  %s1930_s10 = inlined_call_operand.vmem [shape: f32[32,128], index: 10, kind: output, shape index: {1}]   ;;  %s1931_s4 = inlined_call_operand.vmem [shape: f32[56,8], index: 4, kind: input, shape index: {}]   ;;  %s1932_s8 = inlined_call_operand.vmem [shape: f32[128,56], index: 8, kind: input, shape index: {}]   ;;  %s1933_s11 = inlined_call_operand.vmem [shape: f32[64,128], index: 11, kind: output, shape index: {2}]   ;;  %s1934_s12 = inlined_call_operand.vmem [shape: f32[128,128], index: 12, kind: output, shape index: {3}]  }
   0x1   :  { %v37_v0 = vld [vmem:[%s1922_s0 + $0x8] sm:$0xff]  ;;  %v36_v1 = vld [vmem:[%s1922_s0] sm:$0xff]  ;;  %113 = vmatprep.mubr.f32.mxu0 %v1493_v2  ;;  %190 = vmatprep.mubr.f32.mxu1 %v1493_v2  ;;  %v39_v5 = vld [vmem:[%s1922_s0 + $0x18] sm:$0xff]  ;;  %vm482_vm3 = vcmask 195584   ;;  %vm708_vm4 = vcmask 326656   ;;  %vm998_vm5 = vcmask 457728  }
   0x2   :  { %v40_v3 = vld [vmem:[%s1923_s1] sm:$0xff]  ;;  %49 = vmatprep.subr.mxu0 %v37_v0  ;;  %v41_v4 = vld [vmem:[%s1923_s1 + $0x8] sm:$0xff]  ;;  %126 = vmatprep.subr.mxu1 %v39_v5  ;;  %v38_v6 = vld [vmem:[%s1922_s0 + $0x10] sm:$0xff] }
   0x3   :  { %50 = vmatpush1.msra.mxu0 %v36_v1  ;;  %127 = vmatpush1.msra.mxu1 %v38_v6  ;;  %v211_v17 = vld [vmem:[%s1924_s5] sm:$0xff]  ;;  %v212_v19 = vld [vmem:[%s1924_s5 + $0x8] sm:$0xff]  ;;  %v385_v22 = vld [vmem:[%s1925_s2 + $0x10] sm:$0xff] }
   0x4   :  { %1224 = vmatmul.mubr.msk.f32.vlgmr.msra.gmra.mrb[0].mxu0 %vm42_vm0, %v40_v3  ;;  %1226 = vmatmul.mubr.msk.f32.vlgmr.msra.gmra.mrb[0].mxu1 %vm42_vm0, %v40_v3  ;;  %v382_v18 = vld [vmem:[%s1922_s0 + $0x20] sm:$0xff]  ;;  %v384_v21 = vld [vmem:[%s1925_s2 + $0x8] sm:$0xff]  ;;  %v480_v49 = vld [vmem:[%s1926_s6 + $0x10] sm:$0xff] }
   0x5   :  { %119 = vmatprep.mubr.f32.mxu0 %v1493_v2  ;;  %196 = vmatprep.mubr.f32.mxu1 %v1493_v2  ;;  %v383_v20 = vld [vmem:[%s1925_s2] sm:$0xff]  ;;  %v479_v48 = vld [vmem:[%s1926_s6 + $0x8] sm:$0xff]  ;;  %v481_v51 = vld [vmem:[%s1926_s6 + $0x18] sm:$0xff] }
   0x6   :  { %v478_v33 = vld [vmem:[%s1926_s6] sm:$0xff]  ;;  %v584_v50 = vld [vmem:[%s1922_s0 + $0x28] sm:$0xff]  ;;  %v587_v54 = vld [vmem:[%s1928_s3 + $0x10] sm:$0xff] }
   0x7   :  { %v585_v52 = vld [vmem:[%s1928_s3] sm:$0xff]  ;;  %v586_v53 = vld [vmem:[%s1928_s3 + $0x8] sm:$0xff]  ;;  %v588_v55 = vld [vmem:[%s1928_s3 + $0x18] sm:$0xff] }
   0x8   :  { %1225 = vmatmul.mubr.msk.f32.gmra.mrb[2].mxu0 %vm42_vm0, %v41_v4  ;;  %1227 = vmatmul.mubr.msk.f32.gmra.mrb[2].mxu1 %vm42_vm0, %v41_v4  ;;  %v589_v56 = vld [vmem:[%s1928_s3 + $0x20] sm:$0xff] }
   0x9   :  { %284 = vmatprep.mubr.f32.mxu0 %v1493_v2  ;;  %361 = vmatprep.mubr.f32.mxu1 %v1493_v2  ;;  %v700_v61 = vld [vmem:[%s1929_s7] sm:$0xff] }
  0xd7   :  { %v115_v7 = vpop.f32.mrb[0].mxu0  ;;  %v192_v23 = vpop.f32.mrb[0].mxu1 }
  0xd8   :  { %v117_v8 = vpop.f32.mrb[1].mxu0  ;;  %v203_v10 = vmax.f32 %v115_v7, 0.0  ;;  %v194_v24 = vpop.f32.mrb[1].mxu1  ;;  %v205_v25 = vmax.f32 %v192_v23, 0.0  ;;  %v703_v23 = vld [vmem:[%s1929_s7 + $0x18] sm:$0xff] }
  0xd9   :  { %v204_v13 = vmax.f32 %v117_v8, 0.0  ;;  %v206_v26 = vmax.f32 %v194_v24, 0.0  ;;  %v704_v24 = vld [vmem:[%s1929_s7 + $0x20] sm:$0xff] }
  0xdb   :  { %v121_v9 = vpop.f32.mrb[2].mxu0  ;;  %v198_v27 = vpop.f32.mrb[2].mxu1 }
  0xdc   :  { %v207_v11 = vmax.f32 %v121_v9, 0.0  ;;  %v123_v12 = vpop.f32.mrb[3].mxu0  ;;  %v209_v28 = vmax.f32 %v198_v27, 0.0  ;;  %v200_v29 = vpop.f32.mrb[3].mxu1  ;;  %v707_v27 = vld [vmem:[%s1929_s7 + $0x38] sm:$0xff] }
  0xdd   :  { %v208_v14 = vmax.f32 %v123_v12, 0.0  ;;  %v210_v30 = vmax.f32 %v200_v29, 0.0  ;;  %v848_v29 = vld [vmem:[%s1931_s4 + $0x8] sm:$0xff] }
  0xde   :  { %v1461_v15 = vpack.c.bf16 %v207_v11, %v203_v10  ;;  %v1465_v31 = vpack.c.bf16 %v209_v28, %v205_v25  ;;  %v705_v25 = vld [vmem:[%s1929_s7 + $0x28] sm:$0xff]  ;;  %v847_v28 = vld [vmem:[%s1931_s4] sm:$0xff] }
  0xdf   :  { %v1459_v16 = vpack.c.bf16 %v208_v14, %v204_v13  ;;  %v1463_v32 = vpack.c.bf16 %v210_v30, %v206_v26  ;;  %v706_v26 = vld [vmem:[%s1929_s7 + $0x30] sm:$0xff] }
  0xe0   :  { %v849_v30 = vld [vmem:[%s1931_s4 + $0x10] sm:$0xff] }
  0xe1   :  { %1460 = vmatprep.subr.bf16.mxu0 %v1459_v16  ;;  %1464 = vmatprep.subr.bf16.mxu1 %v1463_v32  ;;  %v851_v32 = vld [vmem:[%s1931_s4 + $0x20] sm:$0xff] }
  0xe2   :  { %1462 = vmatpush1.bf16.msra.mxu0 %v1461_v15  ;;  %1466 = vmatpush1.bf16.msra.mxu1 %v1465_v31  ;;  %v850_v31 = vld [vmem:[%s1931_s4 + $0x18] sm:$0xff] }
  0xe3   :  { %1336 = vmatprep.subr.mxu0 %v1493_v2 }
  0xe5   :  { %1228 = vmatmul.mubr.msk.f32.vlgmr.msra.gmra.mrb[4].mxu0 %vm213_vm1, %v211_v17  ;;  %1230 = vmatmul.mubr.msk.f32.vlgmr.msra.gmra.mrb[4].mxu1 %vm213_vm1, %v211_v17 }
  0xe6   :  { %290 = vmatprep.mubr.f32.mxu0 %v1493_v2  ;;  %1337 = vmatpush3.msra.mxu0 %v382_v18 }
  0xe7   :  { %367 = vmatprep.mubr.f32.mxu1 %v1493_v2 }
  0xe9   :  { %1229 = vmatmul.mubr.msk.f32.gmra.mrb[6].mxu0 %vm213_vm1, %v212_v19  ;;  %1231 = vmatmul.mubr.msk.f32.gmra.mrb[6].mxu1 %vm213_vm1, %v212_v19 }
  0xea   :  { %1338 = vmatprep.mubr.msk.f32.mxu0 %vm1494_vm2, %v1493_v2  ;;  %1353 = vmatprep.mubr.msk.f32.mxu1 %vm482_vm3, %v478_v33  ;;  %v852_v33 = vld [vmem:[%s1931_s4 + $0x28] sm:$0xff] }
  0xed   :  { %1339 = vmatmul.mubr.msk.f32.vlgmr.msra.gmra.mrb[8].mxu0 %vm42_vm0, %v383_v20  ;;  %v701_v20 = vld [vmem:[%s1929_s7 + $0x8] sm:$0xff] }
  0xee   :  { %1341 = vmatprep.mubr.msk.f32.mxu0 %vm1494_vm2, %v1493_v2 }
  0xf1   :  { %1342 = vmatmul.mubr.msk.f32.gmra.mrb[10].mxu0 %vm42_vm0, %v384_v21  ;;  %v702_v21 = vld [vmem:[%s1929_s7 + $0x10] sm:$0xff] }
  0xf2   :  { %1344 = vmatprep.mubr.msk.f32.mxu0 %vm1494_vm2, %v1493_v2 }
  0xf5   :  { %1345 = vmatmul.mubr.msk.f32.gmra.mrb[12].mxu0 %vm42_vm0, %v385_v22  ;;  %v846_v22 = vld [vmem:[%s1922_s0 + $0x30] sm:$0xff] }
  0xf6   :  { %1386 = vmatprep.mubr.msk.f32.mxu0 %vm708_vm4, %v700_v61 }
 0x1b8   :  { %v286_v34 = vpop.f32.mrb[4].mxu0  ;;  %v363_v57 = vpop.f32.mrb[4].mxu1 }
 0x1b9   :  { %374 = vst [vmem:[%s1927_s9] sm:$0xff] %v286_v34  ;;  %v288_v35 = vpop.f32.mrb[5].mxu0  ;;  %376 = vst [vmem:[%s1927_s9 + $0x10] sm:$0xff] %v363_v57  ;;  %v365_v58 = vpop.f32.mrb[5].mxu1  ;;  %v853_v34 = vld [vmem:[%s1931_s4 + $0x30] sm:$0xff] }
 0x1ba   :  { %375 = vst [vmem:[%s1927_s9 + $0x8] sm:$0xff] %v288_v35  ;;  %377 = vst [vmem:[%s1927_s9 + $0x18] sm:$0xff] %v365_v58  ;;  %v982_v35 = vld [vmem:[%s1932_s8] sm:$0xff] }
 0x1bc   :  { %v292_v36 = vpop.f32.mrb[6].mxu0  ;;  %v369_v59 = vpop.f32.mrb[6].mxu1 }
 0x1bd   :  { %378 = vst [vmem:[%s1927_s9 + $0x20] sm:$0xff] %v292_v36  ;;  %v294_v37 = vpop.f32.mrb[7].mxu0  ;;  %380 = vst [vmem:[%s1927_s9 + $0x30] sm:$0xff] %v369_v59  ;;  %v371_v60 = vpop.f32.mrb[7].mxu1 }
 0x1be   :  { %379 = vst [vmem:[%s1927_s9 + $0x28] sm:$0xff] %v294_v37  ;;  %381 = vst [vmem:[%s1927_s9 + $0x38] sm:$0xff] %v371_v60 }
 0x1c0   :  { %v461_v38 = vpop.f32.mrb[8].mxu0 }
 0x1c1   :  { %v1340_v39 = vpop.f32.mrb[9].mxu0  ;;  %v475_v41 = vmax.f32 %v461_v38, 0.0 }
 0x1c4   :  { %v466_v40 = vpop.f32.mrb[10].mxu0 }
 0x1c5   :  { %v476_v42 = vmax.f32 %v466_v40, 0.0  ;;  %v1343_v43 = vpop.f32.mrb[11].mxu0 }
 0x1c7   :  { %v1467_v44 = vpack.c.bf16 %v476_v42, %v475_v41 }
 0x1c8   :  { %v471_v45 = vpop.f32.mrb[12].mxu0 }
 0x1c9   :  { %v477_v46 = vmax.f32 %v471_v45, 0.0  ;;  %1468 = vmatprep.subr.bf16.mxu1 %v1467_v44  ;;  %v1346_v47 = vpop.f32.mrb[13].mxu0 }
 0x1ca   :  { %1470 = vmatpush3.bf16.msra.mxu1 %v1467_v44 }
 0x1cb   :  { %1351 = vmatprep.subr.mxu1 %v477_v46 }
 0x1ce   :  { %1352 = vmatpush3.msra.mxu1 %v477_v46 }
 0x1cf   :  { %1354 = vmatmul.mubr.msk.f32.vlgmr.msra.gmra.mrb[8].mxu1 %vm482_vm3, %v479_v48  ;;  %1359 = vmatprep.subr.mxu1 %v1493_v2 }
 0x1d0   :  { %1356 = vmatprep.mubr.msk.f32.mxu1 %vm482_vm3, %v480_v49  ;;  %1360 = vmatpush3.msra.mxu1 %v584_v50 }
 0x1d3   :  { %1357 = vmatmul.mubr.msk.f32.gmra.mrb[10].mxu1 %vm482_vm3, %v481_v51 }
 0x1d4   :  { %1361 = vmatprep.mubr.msk.f32.mxu1 %vm1494_vm2, %v1493_v2 }
 0x1d7   :  { %1362 = vmatmul.mubr.msk.f32.vlgmr.msra.gmra.mrb[12].mxu1 %vm42_vm0, %v585_v52 }
 0x1d8   :  { %1364 = vmatprep.mubr.msk.f32.mxu1 %vm1494_vm2, %v1493_v2 }
 0x1db   :  { %1365 = vmatmul.mubr.msk.f32.gmra.mrb[14].mxu1 %vm42_vm0, %v586_v53 }
 0x1dc   :  { %1367 = vmatprep.mubr.msk.f32.mxu1 %vm1494_vm2, %v1493_v2 }
 0x1df   :  { %1368 = vmatmul.mubr.msk.f32.gmra.mrb[16].mxu1 %vm42_vm0, %v587_v54 }
 0x1e0   :  { %1370 = vmatprep.mubr.msk.f32.mxu1 %vm1494_vm2, %v1493_v2 }
 0x1e3   :  { %1371 = vmatmul.mubr.msk.f32.gmra.mrb[18].mxu1 %vm42_vm0, %v588_v55 }
 0x1e4   :  { %1373 = vmatprep.mubr.msk.f32.mxu1 %vm1494_vm2, %v1493_v2 }
 0x1e7   :  { %1374 = vmatmul.mubr.msk.f32.gmra.mrb[20].mxu1 %vm42_vm0, %v589_v56 }
 0x1e8   :  { %1435 = vmatprep.mubr.msk.f32.mxu1 %vm998_vm5, %v982_v35 }
 0x2a2   :  { %v1355_v62 = vpop.f32.mrb[8].mxu1 }
 0x2a3   :  { %581 = vst [vmem:[%s1930_s10 + $0x8] sm:$0xff] %v1355_v62  ;;  %v561_v63 = vpop.f32.mrb[9].mxu1 }
 0x2a4   :  { %580 = vst [vmem:[%s1930_s10] sm:$0xff] %v561_v63 }
 0x2a6   :  { %v1358_v0 = vpop.f32.mrb[10].mxu1 }
 0x2a7   :  { %583 = vst [vmem:[%s1930_s10 + $0x18] sm:$0xff] %v1358_v0  ;;  %v571_v1 = vpop.f32.mrb[11].mxu1 }
 0x2a8   :  { %582 = vst [vmem:[%s1930_s10 + $0x10] sm:$0xff] %v571_v1 }
 0x2aa   :  { %v671_v3 = vpop.f32.mrb[12].mxu1 }
 0x2ab   :  { %v1363_v4 = vpop.f32.mrb[13].mxu1  ;;  %v695_v6 = vmax.f32 %v671_v3, 0.0 }
 0x2ac   :  { %v983_v4 = vld [vmem:[%s1932_s8 + $0x8] sm:$0xff] }
 0x2ae   :  { %v676_v5 = vpop.f32.mrb[14].mxu1 }
 0x2af   :  { %v696_v7 = vmax.f32 %v676_v5, 0.0  ;;  %v1366_v8 = vpop.f32.mrb[15].mxu1  ;;  %v984_v5 = vld [vmem:[%s1932_s8 + $0x10] sm:$0xff] }
 0x2b0   :  { %v987_v8 = vld [vmem:[%s1932_s8 + $0x28] sm:$0xff] }
 0x2b1   :  { %v1471_v9 = vpack.c.bf16 %v696_v7, %v695_v6  ;;  %v985_v6 = vld [vmem:[%s1932_s8 + $0x18] sm:$0xff]  ;;  %v986_v7 = vld [vmem:[%s1932_s8 + $0x20] sm:$0xff] }
 0x2b2   :  { %v681_v10 = vpop.f32.mrb[16].mxu1 }
 0x2b3   :  { %v1369_v11 = vpop.f32.mrb[17].mxu1  ;;  %1472 = vmatprep.subr.bf16.mxu0 %v1471_v9  ;;  %v697_v13 = vmax.f32 %v681_v10, 0.0  ;;  %v989_v10 = vld [vmem:[%s1932_s8 + $0x38] sm:$0xff] }
 0x2b4   :  { %1474 = vmatpush3.bf16.msra.mxu0 %v1471_v9  ;;  %v988_v9 = vld [vmem:[%s1932_s8 + $0x30] sm:$0xff]  ;;  %v990_v11 = vld [vmem:[%s1932_s8 + $0x40] sm:$0xff] }
 0x2b6   :  { %v686_v12 = vpop.f32.mrb[18].mxu1 }
 0x2b7   :  { %v698_v14 = vmax.f32 %v686_v12, 0.0  ;;  %v1372_v15 = vpop.f32.mrb[19].mxu1  ;;  %v991_v12 = vld [vmem:[%s1932_s8 + $0x48] sm:$0xff] }
 0x2b8   :  { %v994_v15 = vld [vmem:[%s1932_s8 + $0x60] sm:$0xff] }
 0x2b9   :  { %v1475_v16 = vpack.c.bf16 %v698_v14, %v697_v13  ;;  %v992_v13 = vld [vmem:[%s1932_s8 + $0x50] sm:$0xff]  ;;  %v993_v14 = vld [vmem:[%s1932_s8 + $0x58] sm:$0xff] }
 0x2ba   :  { %v691_v17 = vpop.f32.mrb[20].mxu1 }
 0x2bb   :  { %v699_v18 = vmax.f32 %v691_v17, 0.0  ;;  %1476 = vmatprep.subr.bf16.mxu0 %v1475_v16  ;;  %v1375_v19 = vpop.f32.mrb[21].mxu1  ;;  %v996_v17 = vld [vmem:[%s1932_s8 + $0x70] sm:$0xff] }
 0x2bc   :  { %1478 = vmatpush3.bf16.msra.mxu0 %v1475_v16  ;;  %v995_v16 = vld [vmem:[%s1932_s8 + $0x68] sm:$0xff] }
 0x2bd   :  { %1384 = vmatprep.subr.mxu0 %v699_v18 }
 0x2c0   :  { %1385 = vmatpush3.msra.mxu0 %v699_v18  ;;  %v997_v18 = vld [vmem:[%s1932_s8 + $0x78] sm:$0xff] }
 0x2c1   :  { %1387 = vmatmul.mubr.msk.f32.vlgmr.msra.gmra.mrb[14].mxu0 %vm708_vm4, %v701_v20  ;;  %1398 = vmatprep.subr.mxu0 %v1493_v2 }
 0x2c2   :  { %1389 = vmatprep.mubr.msk.f32.mxu0 %vm708_vm4, %v702_v21  ;;  %1399 = vmatpush3.msra.mxu0 %v846_v22 }
 0x2c5   :  { %1390 = vmatmul.mubr.msk.f32.gmra.mrb[16].mxu0 %vm708_vm4, %v703_v23 }
 0x2c6   :  { %1392 = vmatprep.mubr.msk.f32.mxu0 %vm708_vm4, %v704_v24 }
 0x2c9   :  { %1393 = vmatmul.mubr.msk.f32.gmra.mrb[18].mxu0 %vm708_vm4, %v705_v25 }
 0x2ca   :  { %1395 = vmatprep.mubr.msk.f32.mxu0 %vm708_vm4, %v706_v26 }
 0x2cd   :  { %1396 = vmatmul.mubr.msk.f32.gmra.mrb[20].mxu0 %vm708_vm4, %v707_v27 }
 0x2ce   :  { %1400 = vmatprep.mubr.msk.f32.mxu0 %vm1494_vm2, %v1493_v2 }
 0x2d1   :  { %1401 = vmatmul.mubr.msk.f32.vlgmr.msra.gmra.mrb[22].mxu0 %vm42_vm0, %v847_v28 }
 0x2d2   :  { %1403 = vmatprep.mubr.msk.f32.mxu0 %vm1494_vm2, %v1493_v2 }
 0x2d5   :  { %1404 = vmatmul.mubr.msk.f32.gmra.mrb[24].mxu0 %vm42_vm0, %v848_v29 }
 0x2d6   :  { %1406 = vmatprep.mubr.msk.f32.mxu0 %vm1494_vm2, %v1493_v2 }
 0x2d9   :  { %1407 = vmatmul.mubr.msk.f32.gmra.mrb[26].mxu0 %vm42_vm0, %v849_v30 }
 0x2da   :  { %1409 = vmatprep.mubr.msk.f32.mxu0 %vm1494_vm2, %v1493_v2 }
 0x2dd   :  { %1410 = vmatmul.mubr.msk.f32.gmra.mrb[28].mxu0 %vm42_vm0, %v850_v31 }
 0x2de   :  { %1412 = vmatprep.mubr.msk.f32.mxu0 %vm1494_vm2, %v1493_v2 }
 0x2e1   :  { %1413 = vmatmul.mubr.msk.f32.gmra.mrb[30].mxu0 %vm42_vm0, %v851_v32 }
 0x2e2   :  { %1415 = vmatprep.mubr.msk.f32.mxu0 %vm1494_vm2, %v1493_v2 }
 0x2e5   :  { %1416 = vmatmul.mubr.msk.f32.gmra.mrb[32].mxu0 %vm42_vm0, %v852_v33 }
 0x2e6   :  { %1418 = vmatprep.mubr.msk.f32.mxu0 %vm1494_vm2, %v1493_v2 }
 0x2e9   :  { %1419 = vmatmul.mubr.msk.f32.gmra.mrb[34].mxu0 %vm42_vm0, %v853_v34 }
 0x394   :  { %v1388_v36 = vpop.f32.mrb[14].mxu0 }
 0x395   :  { %839 = vst [vmem:[%s1933_s11 + $0x8] sm:$0xff] %v1388_v36  ;;  %v799_v37 = vpop.f32.mrb[15].mxu0 }
 0x396   :  { %838 = vst [vmem:[%s1933_s11] sm:$0xff] %v799_v37 }
 0x398   :  { %v1391_v2 = vpop.f32.mrb[16].mxu0 }
 0x399   :  { %841 = vst [vmem:[%s1933_s11 + $0x18] sm:$0xff] %v1391_v2  ;;  %v809_v38 = vpop.f32.mrb[17].mxu0 }
 0x39a   :  { %840 = vst [vmem:[%s1933_s11 + $0x10] sm:$0xff] %v809_v38 }
 0x39c   :  { %v1394_v39 = vpop.f32.mrb[18].mxu0 }
 0x39d   :  { %843 = vst [vmem:[%s1933_s11 + $0x28] sm:$0xff] %v1394_v39  ;;  %v819_v40 = vpop.f32.mrb[19].mxu0 }
 0x39e   :  { %842 = vst [vmem:[%s1933_s11 + $0x20] sm:$0xff] %v819_v40 }
 0x3a0   :  { %v1397_v41 = vpop.f32.mrb[20].mxu0 }
 0x3a1   :  { %845 = vst [vmem:[%s1933_s11 + $0x38] sm:$0xff] %v1397_v41  ;;  %v829_v42 = vpop.f32.mrb[21].mxu0 }
 0x3a2   :  { %844 = vst [vmem:[%s1933_s11 + $0x30] sm:$0xff] %v829_v42 }
 0x3a4   :  { %v941_v43 = vpop.f32.mrb[22].mxu0 }
 0x3a5   :  { %v1402_v44 = vpop.f32.mrb[23].mxu0  ;;  %v975_v46 = vmax.f32 %v941_v43, 0.0 }
 0x3a8   :  { %v946_v45 = vpop.f32.mrb[24].mxu0 }
 0x3a9   :  { %v976_v47 = vmax.f32 %v946_v45, 0.0  ;;  %v1405_v48 = vpop.f32.mrb[25].mxu0 }
 0x3ab   :  { %v1479_v49 = vpack.c.bf16 %v976_v47, %v975_v46 }
 0x3ac   :  { %v951_v50 = vpop.f32.mrb[26].mxu0 }
 0x3ad   :  { %v1408_v51 = vpop.f32.mrb[27].mxu0  ;;  %1480 = vmatprep.subr.bf16.mxu1 %v1479_v49  ;;  %v977_v53 = vmax.f32 %v951_v50, 0.0 }
 0x3ae   :  { %1482 = vmatpush3.bf16.msra.mxu1 %v1479_v49 }
 0x3b0   :  { %v956_v52 = vpop.f32.mrb[28].mxu0 }
 0x3b1   :  { %v978_v54 = vmax.f32 %v956_v52, 0.0  ;;  %v1411_v55 = vpop.f32.mrb[29].mxu0 }
 0x3b3   :  { %v1483_v56 = vpack.c.bf16 %v978_v54, %v977_v53 }
 0x3b4   :  { %v961_v57 = vpop.f32.mrb[30].mxu0 }
 0x3b5   :  { %v1414_v58 = vpop.f32.mrb[31].mxu0  ;;  %1484 = vmatprep.subr.bf16.mxu1 %v1483_v56  ;;  %v979_v60 = vmax.f32 %v961_v57, 0.0 }
 0x3b6   :  { %1486 = vmatpush3.bf16.msra.mxu1 %v1483_v56 }
 0x3b8   :  { %v966_v59 = vpop.f32.mrb[32].mxu0 }
 0x3b9   :  { %v980_v61 = vmax.f32 %v966_v59, 0.0  ;;  %v1417_v62 = vpop.f32.mrb[33].mxu0 }
 0x3bb   :  { %v1487_v63 = vpack.c.bf16 %v980_v61, %v979_v60 }
 0x3bc   :  { %v971_v0 = vpop.f32.mrb[34].mxu0 }
 0x3bd   :  { %1488 = vmatprep.subr.bf16.mxu1 %v1487_v63  ;;  %v981_v1 = vmax.f32 %v971_v0, 0.0  ;;  %v1420_v3 = vpop.f32.mrb[35].mxu0 }
 0x3be   :  { %1490 = vmatpush3.bf16.msra.mxu1 %v1487_v63 }
 0x3bf   :  { %1433 = vmatprep.subr.mxu1 %v981_v1 }
 0x3c2   :  { %1434 = vmatpush3.msra.mxu1 %v981_v1 }
 0x3c3   :  { %1436 = vmatmul.mubr.msk.f32.vlgmr.msra.gmra.mrb[22].mxu1 %vm998_vm5, %v983_v4 }
 0x3c4   :  { %1438 = vmatprep.mubr.msk.f32.mxu1 %vm998_vm5, %v984_v5 }
 0x3c7   :  { %1439 = vmatmul.mubr.msk.f32.gmra.mrb[24].mxu1 %vm998_vm5, %v985_v6 }
 0x3c8   :  { %1441 = vmatprep.mubr.msk.f32.mxu1 %vm998_vm5, %v986_v7 }
 0x3cb   :  { %1442 = vmatmul.mubr.msk.f32.gmra.mrb[26].mxu1 %vm998_vm5, %v987_v8 }
 0x3cc   :  { %1444 = vmatprep.mubr.msk.f32.mxu1 %vm998_vm5, %v988_v9 }
 0x3cf   :  { %1445 = vmatmul.mubr.msk.f32.gmra.mrb[28].mxu1 %vm998_vm5, %v989_v10 }
 0x3d0   :  { %1447 = vmatprep.mubr.msk.f32.mxu1 %vm998_vm5, %v990_v11 }
 0x3d3   :  { %1448 = vmatmul.mubr.msk.f32.gmra.mrb[30].mxu1 %vm998_vm5, %v991_v12 }
 0x3d4   :  { %1450 = vmatprep.mubr.msk.f32.mxu1 %vm998_vm5, %v992_v13 }
 0x3d7   :  { %1451 = vmatmul.mubr.msk.f32.gmra.mrb[32].mxu1 %vm998_vm5, %v993_v14 }
 0x3d8   :  { %1453 = vmatprep.mubr.msk.f32.mxu1 %vm998_vm5, %v994_v15 }
 0x3db   :  { %1454 = vmatmul.mubr.msk.f32.gmra.mrb[34].mxu1 %vm998_vm5, %v995_v16 }
 0x3dc   :  { %1456 = vmatprep.mubr.msk.f32.mxu1 %vm998_vm5, %v996_v17 }
 0x3df   :  { %1457 = vmatmul.mubr.msk.f32.gmra.mrb[36].mxu1 %vm998_vm5, %v997_v18 }
 0x496   :  { %v1437_v19 = vpop.f32.mrb[22].mxu1 }
 0x497   :  { %1193 = vst [vmem:[%s1934_s12 + $0x8] sm:$0xff] %v1437_v19  ;;  %v1113_v20 = vpop.f32.mrb[23].mxu1 }
 0x498   :  { %1192 = vst [vmem:[%s1934_s12] sm:$0xff] %v1113_v20 }
 0x49a   :  { %v1440_v21 = vpop.f32.mrb[24].mxu1 }
 0x49b   :  { %1195 = vst [vmem:[%s1934_s12 + $0x18] sm:$0xff] %v1440_v21  ;;  %v1123_v22 = vpop.f32.mrb[25].mxu1 }
 0x49c   :  { %1194 = vst [vmem:[%s1934_s12 + $0x10] sm:$0xff] %v1123_v22 }
 0x49e   :  { %v1443_v23 = vpop.f32.mrb[26].mxu1 }
 0x49f   :  { %1197 = vst [vmem:[%s1934_s12 + $0x28] sm:$0xff] %v1443_v23  ;;  %v1133_v24 = vpop.f32.mrb[27].mxu1 }
 0x4a0   :  { %1196 = vst [vmem:[%s1934_s12 + $0x20] sm:$0xff] %v1133_v24 }
 0x4a2   :  { %v1446_v25 = vpop.f32.mrb[28].mxu1 }
 0x4a3   :  { %1199 = vst [vmem:[%s1934_s12 + $0x38] sm:$0xff] %v1446_v25  ;;  %v1143_v26 = vpop.f32.mrb[29].mxu1 }
 0x4a4   :  { %1198 = vst [vmem:[%s1934_s12 + $0x30] sm:$0xff] %v1143_v26 }
 0x4a6   :  { %v1449_v27 = vpop.f32.mrb[30].mxu1 }
 0x4a7   :  { %1201 = vst [vmem:[%s1934_s12 + $0x48] sm:$0xff] %v1449_v27  ;;  %v1153_v28 = vpop.f32.mrb[31].mxu1 }
 0x4a8   :  { %1200 = vst [vmem:[%s1934_s12 + $0x40] sm:$0xff] %v1153_v28 }
 0x4aa   :  { %v1452_v29 = vpop.f32.mrb[32].mxu1 }
 0x4ab   :  { %1203 = vst [vmem:[%s1934_s12 + $0x58] sm:$0xff] %v1452_v29  ;;  %v1163_v30 = vpop.f32.mrb[33].mxu1 }
 0x4ac   :  { %1202 = vst [vmem:[%s1934_s12 + $0x50] sm:$0xff] %v1163_v30 }
 0x4ae   :  { %v1455_v31 = vpop.f32.mrb[34].mxu1 }
 0x4af   :  { %1205 = vst [vmem:[%s1934_s12 + $0x68] sm:$0xff] %v1455_v31  ;;  %v1173_v32 = vpop.f32.mrb[35].mxu1 }
 0x4b0   :  { %1204 = vst [vmem:[%s1934_s12 + $0x60] sm:$0xff] %v1173_v32 }
 0x4b2   :  { %v1458_v33 = vpop.f32.mrb[36].mxu1 }
 0x4b3   :  { %1207 = vst [vmem:[%s1934_s12 + $0x78] sm:$0xff] %v1458_v33  ;;  %v1183_v34 = vpop.f32.mrb[37].mxu1 }
 0x4b4   :  { %1206 = vst [vmem:[%s1934_s12 + $0x70] sm:$0xff] %v1183_v34 }

</bundles_post_ra>
